<compile_context>
chip_gen: v6e
topology: v6e:2x2x1
jax: 0.10.0
libtpu: 0.0.40
codegen_flags: <defaults>
</compile_context>

<pallas_src>
import functools

import jax
import jax.numpy as jnp
from jax.experimental import pallas as pl
from jax.experimental.pallas import tpu as pltpu


_VMEM_LIMIT = 32 * 1024 * 1024  # explicit; safe on v5e/v6e (128 MiB) and v7x (64 MiB)


def _round_up(x, m):
    return ((x + m - 1) // m) * m


def _choose_tiles(m, max_tm=2048):
    """Pick an M tile (multiple of 128) and #tiles; >=2 tiles when possible."""
    m_pad = _round_up(m, 128)
    if m_pad >= 256:
        n_tiles = max(2, pl.cdiv(m_pad, max_tm))
    else:
        n_tiles = 1
    tm = _round_up(pl.cdiv(m_pad, n_tiles), 128)
    return tm, n_tiles, tm * n_tiles


# ------------------------------ Pallas kernels ------------------------------

def _gemm_bias_kernel(w_ref, x_ref, b_ref, o_ref, *, relu):
    """(Cout, K) @ (K, TM) in bf16 -> f32 acc; +bias (+ReLU); bf16 store."""
    acc = jnp.dot(w_ref[...], x_ref[...], preferred_element_type=jnp.float32)
    y = acc + b_ref[...]
    if relu:
        y = jnp.maximum(y, 0.0)
    o_ref[...] = y.astype(o_ref.dtype)


def _gemm_bias_res_kernel(w_ref, x_ref, b_ref, r_ref, o_ref, *, relu):
    """Same as above with the residual add fused before the ReLU."""
    acc = jnp.dot(w_ref[...], x_ref[...], preferred_element_type=jnp.float32)
    y = acc + b_ref[...] + r_ref[...].astype(jnp.float32)
    if relu:
        y = jnp.maximum(y, 0.0)
    o_ref[...] = y.astype(o_ref.dtype)


def _max9_kernel(*refs):
    """Elementwise max of 9 (C, TM) taps; compare in f32, store in input dtype."""
    o_ref = refs[-1]
    acc = refs[0][...].astype(jnp.float32)
    for r in refs[1:-1]:
        acc = jnp.maximum(acc, r[...].astype(jnp.float32))
    o_ref[...] = acc.astype(o_ref.dtype)


def _mean_kernel(x_ref, o_ref):
    """Global average pool: (C, N, H*W) -> (C, N) with f32 accumulation."""
    x = x_ref[...].astype(jnp.float32)
    o_ref[...] = jnp.mean(x, axis=-1)


# ------------------------------ GEMM wrapper ---------------------------------

def _fused_gemm(wm, patches, bias, residual=None, relu=True,
                out_dtype=jnp.bfloat16):
    """wm:(Cout,K) bf16, patches:(K,M) bf16, bias:(Cout,1) f32 -> (Cout,M)."""
    cout, k = wm.shape
    _, m = patches.shape
    tm, n_tiles, m_pad = _choose_tiles(m)

    if m_pad != m:  # only the deepest (tiny-M) layers pay for this pad
        patches = jnp.pad(patches, ((0, 0), (0, m_pad - m)))
        if residual is not None:
            residual = jnp.pad(residual, ((0, 0), (0, m_pad - m)))

    w_spec = pl.BlockSpec((cout, k), lambda i: (0, 0))
    x_spec = pl.BlockSpec((k, tm), lambda i: (0, i))
    b_spec = pl.BlockSpec((cout, 1), lambda i: (0, 0))
    o_spec = pl.BlockSpec((cout, tm), lambda i: (0, i))

    if residual is None:
        kernel = functools.partial(_gemm_bias_kernel, relu=relu)
        in_specs = [w_spec, x_spec, b_spec]
        args = (wm, patches, bias)
    else:
        kernel = functools.partial(_gemm_bias_res_kernel, relu=relu)
        in_specs = [w_spec, x_spec, b_spec, o_spec]
        args = (wm, patches, bias, residual)

    out = pl.pallas_call(
        kernel,
        out_shape=jax.ShapeDtypeStruct((cout, m_pad), out_dtype),
        grid=(n_tiles,),
        in_specs=in_specs,
        out_specs=o_spec,
        compiler_params=pltpu.CompilerParams(
            dimension_semantics=("parallel",),
            vmem_limit_bytes=_VMEM_LIMIT),
    )(*args)
    return out[:, :m]


# ------------------------- conv / pool building blocks -----------------------

def fold_bn(gamma, beta, mean, var, eps=1e-5):
    """Eval-mode BatchNorm folded to y = x*scale + bias (all in f32)."""
    scale = gamma / jnp.sqrt(var + eps)
    bias = beta - mean * scale
    return scale, bias


def conv_bn_act(x_cm, w_oihw, scale, bias, *, stride, padding, relu,
                residual_cm=None):
    """Conv2d (no bias) + folded BN (+ residual) (+ ReLU), channel-major I/O.

    x_cm: (Cin, N, H, W) bf16.  Returns (Cout, N, Ho, Wo) bf16.
    """
    cin, n, h, w = x_cm.shape
    cout, cin_w, kh_sz, kw_sz = w_oihw.shape
    assert cin == cin_w
    ho = (h + 2 * padding - kh_sz) // stride + 1
    wo = (w + 2 * padding - kw_sz) // stride + 1
    m = n * ho * wo

    # Fold BN scale into the weight matrix in f32, then cast to bf16.
    wm = jnp.transpose(w_oihw, (0, 2, 3, 1)).reshape(cout, kh_sz * kw_sz * cin)
    wm = (wm * scale[:, None]).astype(jnp.bfloat16)
    b = bias.reshape(cout, 1).astype(jnp.float32)

    if padding:
        xp = jnp.pad(x_cm, ((0, 0), (0, 0),
                            (padding, padding), (padding, padding)))
    else:
        xp = x_cm

    # im2col in channel-major layout -> patches (K, M) with K = (kh, kw, cin),
    # matching the weight reshape above.  Built/cast to bf16 by XLA.
    taps = []
    for kh in range(kh_sz):
        for kw in range(kw_sz):
            taps.append(xp[:, :, kh:kh + ho * stride:stride,
                           kw:kw + wo * stride:stride].reshape(cin, m))
    patches = jnp.concatenate(taps, axis=0) if len(taps) > 1 else taps[0]

    res = None if residual_cm is None else residual_cm.reshape(cout, m)
    out = _fused_gemm(wm, patches, b, residual=res, relu=relu)
    return out.reshape(cout, n, ho, wo)


def maxpool_3x3_s2_p1(x_cm):
    """3x3/stride-2/pad-1 max pool on (C, N, H, W), gridded over M tiles."""
    c, n, h, w = x_cm.shape
    ho = (h + 2 - 3) // 2 + 1
    wo = (w + 2 - 3) // 2 + 1
    m = n * ho * wo
    xp = jnp.pad(x_cm, ((0, 0), (0, 0), (1, 1), (1, 1)),
                 constant_values=-jnp.inf)
    taps = [xp[:, :, kh:kh + 2 * ho:2, kw:kw + 2 * wo:2].reshape(c, m)
            for kh in range(3) for kw in range(3)]

    tm, n_tiles, m_pad = _choose_tiles(m, max_tm=512)
    if m_pad != m:
        taps = [jnp.pad(t, ((0, 0), (0, m_pad - m))) for t in taps]

    spec = pl.BlockSpec((c, tm), lambda i: (0, i))
    out = pl.pallas_call(
        _max9_kernel,
        out_shape=jax.ShapeDtypeStruct((c, m_pad), x_cm.dtype),
        grid=(n_tiles,),
        in_specs=[spec] * 9,
        out_specs=spec,
        compiler_params=pltpu.CompilerParams(
            dimension_semantics=("parallel",),
            vmem_limit_bytes=_VMEM_LIMIT),
    )(*taps)
    return out[:, :m].reshape(c, n, ho, wo)


def global_avgpool(x_cm):
    """(C, N, H, W) -> (N, C) f32, matching torch.flatten(avgpool(x), 1)."""
    c, n, h, w = x_cm.shape
    x = x_cm.reshape(c, n, h * w)
    out = pl.pallas_call(
        _mean_kernel,
        out_shape=jax.ShapeDtypeStruct((c, n), jnp.float32),
        grid=(1,),
        in_specs=[pl.BlockSpec((c, n, h * w), lambda i: (0, 0, 0))],
        out_specs=pl.BlockSpec((c, n), lambda i: (0, 0)),
        compiler_params=pltpu.CompilerParams(vmem_limit_bytes=_VMEM_LIMIT),
    )(x)
    return jnp.transpose(out, (1, 0))


# ------------------------------ parameters -----------------------------------

def init_params(key, base=8):
    """ResNet-18 topology with a reduced base width (deterministic init)."""
    widths = [base, base * 2, base * 4, base * 8]
    keys = iter(jax.random.split(key, 256))

    def conv_w(cout, cin, k):
        return 0.1 * jax.random.normal(next(keys), (cout, cin, k, k), jnp.float32)

    def bn(c):
        g = 1.0 + 0.1 * jax.random.normal(next(keys), (c,), jnp.float32)
        b = 0.1 * jax.random.normal(next(keys), (c,), jnp.float32)
        m = 0.1 * jax.random.normal(next(keys), (c,), jnp.float32)
        v = 1.0 + jnp.abs(0.1 * jax.random.normal(next(keys), (c,), jnp.float32))
        return (g, b, m, v)

    params = {"conv1": conv_w(base, 3, 7), "bn1": bn(base), "layers": []}
    cin = base
    for li, cout in enumerate(widths):
        blocks = []
        for bi in range(2):  # 2 BasicBlocks per layer (resnet18)
            stride = 2 if (li > 0 and bi == 0) else 1
            blk = {
                "stride": stride,
                "conv1": conv_w(cout, cin, 3), "bn1": bn(cout),
                "conv2": conv_w(cout, cout, 3), "bn2": bn(cout),
            }
            if stride != 1 or cin != cout:
                blk["down_conv"] = conv_w(cout, cin, 1)
                blk["down_bn"] = bn(cout)
            blocks.append(blk)
            cin = cout
        params["layers"].append(blocks)
    return params


# ------------------------------ forward pass ----------------------------------

def basic_block(x, blk):
    s = blk["stride"]
    s1, b1 = fold_bn(*blk["bn1"])
    out = conv_bn_act(x, blk["conv1"], s1, b1, stride=s, padding=1, relu=True)

    if "down_conv" in blk:
        sd, bd = fold_bn(*blk["down_bn"])
        identity = conv_bn_act(x, blk["down_conv"], sd, bd,
                               stride=s, padding=0, relu=False)
    else:
        identity = x

    s2, b2 = fold_bn(*blk["bn2"])
    return conv_bn_act(out, blk["conv2"], s2, b2, stride=1, padding=1,
                       relu=True, residual_cm=identity)


def resnet_embedder_forward(x_nchw, params, pool=True):
    # torch.no_grad(): inference only — no gradients are taken here anyway.
    # NCHW -> channel-major (C, N, H, W), bf16 activations.
    x = jnp.transpose(x_nchw, (1, 0, 2, 3)).astype(jnp.bfloat16)
    s1, b1 = fold_bn(*params["bn1"])
    x = conv_bn_act(x, params["conv1"], s1, b1, stride=2, padding=3, relu=True)
    x = maxpool_3x3_s2_p1(x)
    for blocks in params["layers"]:
        for blk in blocks:
            x = basic_block(x, blk)
    if not pool:
        # back to NCHW like torch (f32)
        return jnp.transpose(x, (1, 0, 2, 3)).astype(jnp.float32)
    return global_avgpool(x)  # == torch.flatten(avgpool(x), 1) -> (N, C) f32


# ---------------------------------- main --------------------------------------

if __name__ == "__main__":
    key = jax.random.PRNGKey(0)
    kx, kp = jax.random.split(key)

    # Small ResNet: base width 8 -> channels [8, 16, 32, 64].
    params = init_params(kp, base=8)

    # NCHW input, like the PyTorch module.
    x = jax.random.normal(kx, (2, 3, 64, 64), jnp.float32)

    out = resnet_embedder_forward(x, params, pool=True)
    out = jax.block_until_ready(out)
    assert out.shape == (2, 64) and out.dtype == jnp.float32
    print("KERNEL_OK")
</pallas_src>

<mosaic_0001>
module attributes {stable_mosaic.version = 11 : i64} {
  func.func @_gemm_bias_kernel(%arg0: i32, %arg1: memref<8x147xbf16, #tpu.memory_space<vmem>>, %arg2: memref<147x1024xbf16, #tpu.memory_space<vmem>>, %arg3: memref<8x1xf32, #tpu.memory_space<vmem>>, %arg4: memref<8x1024xbf16, #tpu.memory_space<vmem>>) attributes {dimension_semantics = [#tpu.dimension_semantics<parallel>], iteration_bounds = array<i64: 2>, scalar_prefetch = 0 : i64, scratch_operands = 0 : i64, tpu.core_type = #tpu.core_type<tc>, window_params = [{pipeline_mode = #tpu.pipeline_mode<synchronous>, transform_indices = @transform_0, window_bounds = array<i64: 8, 147>}, {transform_indices = @transform_1, window_bounds = array<i64: 147, 1024>}, {pipeline_mode = #tpu.pipeline_mode<synchronous>, transform_indices = @transform_2, window_bounds = array<i64: 8, 1>}, {transform_indices = @transform_3, window_bounds = array<i64: 8, 1024>}]} {
    %c0 = arith.constant 0 : index
    %c0_0 = arith.constant 0 : index
    %0 = vector.load %arg1[%c0, %c0_0] : memref<8x147xbf16, #tpu.memory_space<vmem>>, vector<8x147xbf16>
    %c0_1 = arith.constant 0 : index
    %c0_2 = arith.constant 0 : index
    %1 = vector.load %arg2[%c0_1, %c0_2] : memref<147x1024xbf16, #tpu.memory_space<vmem>>, vector<147x1024xbf16>
    %cst = arith.constant dense<0.000000e+00> : vector<8x1024xf32>
    %2 = tpu.matmul %0, %1, %cst {dimension_numbers = #tpu.dot_dimension_numbers<[1], [0], [0], [1], [0, 0, 1, 1], [], []>} : vector<8x147xbf16>, vector<147x1024xbf16>, vector<8x1024xf32> -> vector<8x1024xf32>
    %c0_3 = arith.constant 0 : index
    %c0_4 = arith.constant 0 : index
    %3 = vector.load %arg3[%c0_3, %c0_4] : memref<8x1xf32, #tpu.memory_space<vmem>>, vector<8x1xf32>
    %4 = vector.broadcast %3 : vector<8x1xf32> to vector<8x1024xf32>
    %5 = arith.addf %2, %4 : vector<8x1024xf32>
    %cst_5 = arith.constant 0.000000e+00 : f32
    %6 = vector.broadcast %cst_5 : f32 to vector<8x1024xf32>
    %7 = arith.maximumf %5, %6 : vector<8x1024xf32>
    %8 = arith.truncf %7 : vector<8x1024xf32> to vector<8x1024xbf16>
    %c0_6 = arith.constant 0 : index
    %c0_7 = arith.constant 0 : index
    %9 = vector.load %arg4[%c0_6, %c0_7] : memref<8x1024xbf16, #tpu.memory_space<vmem>>, vector<8x1024xbf16>
    tpu.vector_store %arg4[%c0_6, %c0_7], %8 {strides = array<i32>} : memref<8x1024xbf16, #tpu.memory_space<vmem>>, vector<8x1024xbf16>,
    return
  }
  func.func @transform_0(%arg0: i32) -> (i32, i32) {
    %c0_i32 = arith.constant 0 : i32
    %c0_i32_0 = arith.constant 0 : i32
    %c0_i32_1 = arith.constant 0 : i32
    return %c0_i32, %c0_i32_0 : i32, i32
  }
  func.func @transform_1(%arg0: i32) -> (i32, i32) {
    %c0_i32 = arith.constant 0 : i32
    %c0_i32_0 = arith.constant 0 : i32
    return %c0_i32, %arg0 : i32, i32
  }
  func.func @transform_2(%arg0: i32) -> (i32, i32) {
    %c0_i32 = arith.constant 0 : i32
    %c0_i32_0 = arith.constant 0 : i32
    %c0_i32_1 = arith.constant 0 : i32
    return %c0_i32, %c0_i32_0 : i32, i32
  }
  func.func @transform_3(%arg0: i32) -> (i32, i32) {
    %c0_i32 = arith.constant 0 : i32
    %c0_i32_0 = arith.constant 0 : i32
    return %c0_i32, %arg0 : i32, i32
  }
}

</mosaic_0001>

<bundles_post_ra>
// kernel: tpu_custom_call.1
= control target key start
LH: loop header
LB: loop body
LE: loop exit
PB: predicated region body
PF: predicated region fallthrough
CT: control target
= control target key end

     0   :  { %8 = vsyncpa [#allocation3], 0  ;;  %s1538_s0 = inlined_call_operand.vmem [shape: bf16[8,147], index: 0, kind: input, shape index: {}]   ;;  %s1539_s1 = inlined_call_operand.hbm [shape: bf16[147,2048], index: 1, kind: input, shape index: {}]   ;;  %s1540_s2 = inlined_call_operand.vmem [shape: f32[8,1], index: 2, kind: input, shape index: {}]   ;;  %s1541_s3 = inlined_call_operand.hbm [shape: bf16[8,2048], index: 3, kind: output, shape index: {}]  }
   0x1   :  { %10 = vsyncpa [#allocation3 + $0x1], 0 }
   0x2   :  { %11 = vsyncpa [#allocation4], 0 }
   0x3   :  { %13 = vsyncpa [#allocation4 + $0x1], 0  ;;  %s1279_s12 = smov 0   ;;  %s1281_s13 = smov 0  }
   0x4   :  { %s1283_s14 = smov 0   ;;  %s1285_s15 = smov 0  }
   0x5 LB: > { %s1300_s16 = sadd.s32 4294967295, %s1250_s15   ;;  %s986_s17 = sadd.s32 4294967294, %s1250_s15   ;;  %s1250_s15 = sphi %s1285_s15, %s1556_s15   ;;  %s1246_s14 = sphi %s1283_s14, %s1555_s14   ;;  %s1242_s13 = sphi %s1281_s13, %s1554_s13   ;;  %s1238_s12 = sphi %s1279_s12, %s1553_s12  }
   0x6   : > { %s1304_s18 = sadd.s32 1, %s1250_s15   ;;  %s47_s19 = sadd.s32 1, %s1246_s14 }
   0x7   : > { %s44_s20 = ssub.s32 %s1250_s15, %s1304_s18  ;;  %p54_p0 = scmp.ne.s32.totalorder %s1246_s14, %s1242_s13 }
   0x8   : > { %p45_p1 = scmp.eq.s32.totalorder %s44_s20, 0  ;;  %p55_p2 = scmp.eq.s32.totalorder %s1250_s15, 0 }
   0x9   : > { %p60_p3 = scmp.ne.s32.totalorder %s1242_s13, %s1238_s12  ;;  %p61_p4 = scmp.eq.s32.totalorder %s1300_s16, 0 }
   0xa   : > { %s1316_s21 = scalar_select %p45_p1, %s1246_s14, %s47_s19  }
   0xb   : > { %p56_p5 = por %p55_p2, %p54_p0  ;;  %p1318_p6 = por %p61_p4, %p60_p3 }
   0xc   : > { %p105_p7 = scmp.eq.s32.totalorder %s1300_s16, 1  ;;  %p111_p8 = scmp.eq.s32.totalorder %s986_s17, 1 }
   0xd   : > { %s1544_s22 = scalar_select %p1318_p6, 1, 0 }
   0xe   : > { %p1108_p10 = scmp.lt.s32.totalorder %s1250_s15, 2  ;;  %p1325_p11 = por %p105_p7, %p54_p0 }
   0xf   : > { %p1329_p12 = por %p111_p8, %p60_p3  ;;  %s137_s25 = sand.u32 1, %s1246_s14  }
  0x10   : > { %s1545_s23 = scalar_select %p1325_p11, 1, 0 }
  0x11   : > { %s1546_s24 = scalar_select %p1329_p12, 1, 0 }
  0x12   : > { %s1088_s26 = sshll.u32 %s1250_s15, 9  ;;  %s1094_s27 = smul.u32 608, %s137_s25 }
  0x13   : > { %s1338_s30 = scalar_lea.hbm %s1539_s1, %s1088_s26  ;;  %p1340_p13 = pnand %p1108_p10, %p56_p5 }
  0x14   : > { %s141_s5 = scalar_lea.vmem [#allocation2], %s1094_s27  ;;  %s1347_s7 = scalar_lea.sflag [#allocation3], %s137_s25 }
  0x15   : > { %s148_s6 = sshll.u32 %s141_s5, 4  ;;  %s1158_s8 = scalar_lea.hbm %s1338_s30, 9728  ;;  %s1344_s6 = int_to_ptr.vmem [resolvable:$true] %s148_s6 }
  0x16   : > { %p1159_p1 = scmp.ne.s32.totalorder %s1338_s30, %s1158_s8  ;;  %p1160_p2 = pneg %p1340_p13 }
  0x17   : > { %s1163_s11 = scalar_lea.hbm %s1539_s1, 19456  ;;  %p1164_p5 = scmp.lt.s32.totalorder %s1338_s30, %s1539_s1 }
  0x18   : > { %p1161_p3 = pnand %p1160_p2, %p1159_p1  ;;  %p1165_p7 = scmp.lt.s32.totalorder %s1163_s11, %s1158_s8 }
  0x1a   : > { %p1162_p4 = pneg %p1161_p3  ;;  %p1166_p8 = por %p1165_p7, %p1164_p5 }
  0x1c   : > { %p1167_p10 = pnand %p1166_p8, %p1162_p4 }
  0x1e   : > { %1170 = shalt.err (!%p1167_p10)
}
  0x1f   : > { %s1171_s20 = scalar_lea.vmem %s1344_s6, 9728  ;;  %s1252_s25 = smov [#allocation2]  }
  0x20   : > { %p1172_p9 = scmp.ne.s32.totalorder %s1344_s6, %s1171_s20  ;;  %s1176_s26 = sshll.u32 %s1252_s25, 4  ;;  %s1177_s26 = int_to_ptr.vmem [resolvable:$false] %s1176_s26 }
  0x21   : > { %s1178_s27 = scalar_lea.vmem %s1177_s26, 19456  ;;  %p1179_p3 = scmp.lt.s32.totalorder %s1344_s6, %s1177_s26 }
  0x22   : > { %p1174_p0 = pnand %p1172_p9, %p1160_p2  ;;  %p1180_p12 = scmp.lt.s32.totalorder %s1178_s27, %s1171_s20 }
  0x24   : > { %p1175_p1 = pneg %p1174_p0  ;;  %p1181_p11 = por %p1180_p12, %p1179_p3 }
  0x26   : > { %p1182_p6 = pnand %p1181_p11, %p1175_p1 }
  0x28   : > { %1185 = shalt.err (!%p1182_p6)
}
  0x29   : > { %s1253_s28 = smov 1024   ;;  %s1254_s29 = smov 512  }
  0x2a   : > { %s1255_s5 = smov 32   ;;  %p156_p9 = scmp.lt.s32.totalorder %s1250_s15, 3 }
  0x2b   : > { %1103 = dma.hbm_to_vmem [thread:$0]  (!%p1340_p13), %s1338_s30, 9728, %s1344_s6, %s1347_s7, %s1253_s28, %s1254_s29, %s1255_s5  }
  0x2c   : > { %p1548_p0 = scmp.ge.s32.totalorder %s1250_s15, 1 }
  0x2e   : > { %p157_p2 = pnand %p1548_p0, %p156_p9 }
  0x2f   : > { %s1372_s8 = sand.u32 (!%p157_p2), 1, %s1242_s13   ;;  %p1549_p6 = scmp.ne.s32.totalorder (!%p157_p2), %s1544_s22, 0 }
  0x30   : > { %160 = sbr.rel (%p157_p2) target bundleno = 352 (0x160), region = 32  ;;  %s163_s10 = scalar_lea.sflag (!%p157_p2), [#allocation3], %s1372_s8 }
  0x31   : > { %s1095_s9 = smul.u32 (!%p157_p2), 608, %s1372_s8 }
  0x33   : > { %s1376_s11 = scalar_lea.vmem (!%p157_p2), [#allocation2], %s1095_s9 }
  0x35   : > { %1229 = dma.done.wait (%p1549_p6), %s163_s10, 9728  }
  0x36   : > { %1231 = vsyncadd (%p1549_p6), %s163_s10, 4294957568  ;;  %v1256_v0 = vmov 0   ;;  %v249_v1 = vld [vmem:[%s1376_s11 + $0x1c0] sm:$0xff]  ;;  %v250_v3 = vld [vmem:[%s1376_s11 + $0x1c8] sm:$0xff]  ;;  %vm661_vm0 = vcmask 154624   ;;  %vm665_vm1 = vcmask 1040384  }
  0x37   : > { %1147 = vset.pattern.permute.xlu0 %v1256_v0  ;;  %v253_v2 = vld [vmem:[%s1376_s11 + $0x1e0] sm:$0xff]  ;;  %v254_v5 = vld [vmem:[%s1376_s11 + $0x1e8] sm:$0xff]  ;;  %vm666_vm2 = vcmask 1041408   ;;  %v1257_v62 = vmov 65535   ;;  %s992_s7 = sshll.u32 %s1372_s8, 5  ;;  %s1093_s19 = sshll.u32 %s1300_s16, 9 }
  0x38   : > { %v1052_v4 = vcombine.high %v249_v1, %v253_v2  ;;  %v1051_v6 = vcombine.low %v249_v1, %v253_v2  ;;  %v241_v7 = vld [vmem:[%s1376_s11 + $0x180] sm:$0xff]  ;;  %v1054_v9 = vcombine.high %v250_v3, %v254_v5  ;;  %v1053_v10 = vcombine.low %v250_v3, %v254_v5  ;;  %v242_v12 = vld [vmem:[%s1376_s11 + $0x188] sm:$0xff]  ;;  %s188_s17 = scalar_lea.vmem [#allocation5], %s992_s7  ;;  %s1501_s27 = scalar_lea.hbm %s1541_s3, %s1093_s19 }
  0x39   : > { %v245_v8 = vld [vmem:[%s1376_s11 + $0x1a0] sm:$0xff]  ;;  %v246_v13 = vld [vmem:[%s1376_s11 + $0x1a8] sm:$0xff]  ;;  %v667_v63 = vsel %vm665_vm1, 4294967295, %v1257_v62  ;;  %s916_s20 = sshll.u32 %s188_s17, 4  ;;  %s902_s28 = scalar_lea.sflag [#allocation4], %s1372_s8  ;;  %s917_s20 = int_to_ptr.vmem [resolvable:$true] %s916_s20 }
  0x3a   : > { %v1044_v11 = vcombine.high %v241_v7, %v245_v8  ;;  %v233_v14 = vld [vmem:[%s1376_s11 + $0x140] sm:$0xff]  ;;  %693 = vmatprep.subr.bf16.mxu0 %v1052_v4  ;;  %v1046_v15 = vcombine.high %v242_v12, %v246_v13  ;;  %v234_v17 = vld [vmem:[%s1376_s11 + $0x148] sm:$0xff]  ;;  %734 = vmatprep.subr.bf16.mxu1 %v1054_v9  ;;  %v1043_v19 = vcombine.low %v241_v7, %v245_v8  ;;  %v1432_v7 = vsel %vm666_vm2, %v667_v63, 0  ;;  %s1186_s29 = scalar_lea.vmem %s917_s20, 512  ;;  %p1550_p12 = scmp.ne.s32.totalorder %s1545_s23, 0 }
  0x3b   : > { %v237_v16 = vld [vmem:[%s1376_s11 + $0x160] sm:$0xff]  ;;  %v238_v18 = vld [vmem:[%s1376_s11 + $0x168] sm:$0xff]  ;;  %694 = vmatpush1.bf16.msra.mxu0 %v1051_v6  ;;  %735 = vmatpush1.bf16.msra.mxu1 %v1053_v10  ;;  %v1045_v20 = vcombine.low %v242_v12, %v246_v13  ;;  %p1187_p11 = scmp.ne.s32.totalorder %s917_s20, %s1186_s29  ;;  %s1258_s16 = smov [#allocation5]  }
  0x3c   : > { %695 = vmatprep.subr.bf16.mxu0 %v1044_v11  ;;  %v1036_v21 = vcombine.high %v233_v14, %v237_v16  ;;  %736 = vmatprep.subr.bf16.mxu1 %v1046_v15  ;;  %v1038_v22 = vcombine.high %v234_v17, %v238_v18  ;;  %v225_v23 = vld [vmem:[%s1376_s11 + $0x100] sm:$0xff]  ;;  %v226_v25 = vld [vmem:[%s1376_s11 + $0x108] sm:$0xff]  ;;  %v1035_v27 = vcombine.low %v233_v14, %v237_v16  ;;  %s1190_s5 = sshll.u32 %s1258_s16, 4  ;;  %s1191_s5 = int_to_ptr.vmem [resolvable:$false] %s1190_s5 }
  0x3d   : > { %v229_v24 = vld [vmem:[%s1376_s11 + $0x120] sm:$0xff]  ;;  %v230_v26 = vld [vmem:[%s1376_s11 + $0x128] sm:$0xff]  ;;  %v1037_v28 = vcombine.low %v234_v17, %v238_v18  ;;  %p1188_p13 = pnand %p1187_p11, %p1550_p12  ;;  %s1192_s9 = scalar_lea.vmem %s1191_s5, 1024 }
  0x3e   : > { %v1028_v29 = vcombine.high %v225_v23, %v229_v24  ;;  %v1030_v30 = vcombine.high %v226_v25, %v230_v26  ;;  %v217_v31 = vld [vmem:[%s1376_s11 + $0xc0] sm:$0xff]  ;;  %v218_v33 = vld [vmem:[%s1376_s11 + $0xc8] sm:$0xff]  ;;  %v1027_v35 = vcombine.low %v225_v23, %v229_v24  ;;  %v1029_v37 = vcombine.low %v226_v25, %v230_v26  ;;  %v251_v23 = vld [vmem:[%s1376_s11 + $0x1d0] sm:$0xff]  ;;  %p1193_p5 = scmp.lt.s32.totalorder %s917_s20, %s1191_s5  ;;  %p1194_p7 = scmp.lt.s32.totalorder %s1192_s9, %s1186_s29 }
  0x3f   : > { %696 = vmatpush1.bf16.msra.mxu0 %v1043_v19  ;;  %737 = vmatpush1.bf16.msra.mxu1 %v1045_v20  ;;  %v221_v32 = vld [vmem:[%s1376_s11 + $0xe0] sm:$0xff]  ;;  %v222_v34 = vld [vmem:[%s1376_s11 + $0xe8] sm:$0xff]  ;;  %v255_v24 = vld [vmem:[%s1376_s11 + $0x1f0] sm:$0xff]  ;;  %p1189_p4 = pneg %p1188_p13 }
  0x40   : > { %697 = vmatprep.subr.bf16.mxu0 %v1036_v21  ;;  %738 = vmatprep.subr.bf16.mxu1 %v1038_v22  ;;  %v1405_v36 = vld [vmem:[%s1538_s0] sm:$0xff]  ;;  %v1020_v38 = vcombine.high %v217_v31, %v221_v32  ;;  %v1022_v39 = vcombine.high %v218_v33, %v222_v34  ;;  %v210_v43 = vld [vmem:[%s1376_s11 + $0x88] sm:$0xff]  ;;  %v1019_v45 = vcombine.low %v217_v31, %v221_v32  ;;  %v252_v25 = vld [vmem:[%s1376_s11 + $0x1d8] sm:$0xff]  ;;  %p1195_p8 = por %p1194_p7, %p1193_p5 }
  0x41   : > { %v209_v40 = vld [vmem:[%s1376_s11 + $0x80] sm:$0xff]  ;;  %v1411_v42 = vcombine.high %v1405_v36, %v1405_v36  ;;  %v214_v44 = vld [vmem:[%s1376_s11 + $0xa8] sm:$0xff]  ;;  %v1021_v46 = vcombine.low %v218_v33, %v222_v34  ;;  %v256_v26 = vld [vmem:[%s1376_s11 + $0x1f8] sm:$0xff]  ;;  %v1450_v33 = vcombine.low %v1405_v36, %v1405_v36 }
  0x42   : > { %v213_v41 = vld [vmem:[%s1376_s11 + $0xa0] sm:$0xff]  ;;  %v1014_v48 = vcombine.high %v210_v43, %v214_v44  ;;  %v202_v51 = vld [vmem:[%s1376_s11 + $0x48] sm:$0xff]  ;;  %v1013_v54 = vcombine.low %v210_v43, %v214_v44  ;;  %v243_v31 = vld [vmem:[%s1376_s11 + $0x190] sm:$0xff]  ;;  %p1196_p10 = pnand %p1195_p8, %p1189_p4 }
  0x43   : > { %698 = vmatpush1.bf16.msra.mxu0 %v1035_v27  ;;  %739 = vmatpush1.bf16.msra.mxu1 %v1037_v28  ;;  %v1012_v47 = vcombine.high %v209_v40, %v213_v41  ;;  %v201_v49 = vld [vmem:[%s1376_s11 + $0x40] sm:$0xff]  ;;  %v206_v52 = vld [vmem:[%s1376_s11 + $0x68] sm:$0xff]  ;;  %v1011_v53 = vcombine.low %v209_v40, %v213_v41  ;;  %v247_v32 = vld [vmem:[%s1376_s11 + $0x1b0] sm:$0xff] }
  0x44   : > { %699 = vmatprep.subr.bf16.mxu0 %v1028_v29  ;;  %740 = vmatprep.subr.bf16.mxu1 %v1030_v30  ;;  %v205_v50 = vld [vmem:[%s1376_s11 + $0x60] sm:$0xff]  ;;  %v1006_v56 = vcombine.high %v202_v51, %v206_v52  ;;  %v194_v60 = vld [vmem:[%s1376_s11 + $0x8] sm:$0xff]  ;;  %v1005_v2 = vcombine.low %v202_v51, %v206_v52  ;;  %v1056_v29 = vcombine.high %v251_v23, %v255_v24  ;;  %v244_v34 = vld [vmem:[%s1376_s11 + $0x198] sm:$0xff] }
  0x45   : > { %1075 = vmatprep.mubr.msk.bf16.mxu0 %vm661_vm0, %v1411_v42  ;;  %1076 = vmatprep.mubr.msk.bf16.mxu1 %vm661_vm0, %v1411_v42  ;;  %v1004_v55 = vcombine.high %v201_v49, %v205_v50  ;;  %v193_v57 = vld [vmem:[%s1376_s11] sm:$0xff]  ;;  %v198_v61 = vld [vmem:[%s1376_s11 + $0x28] sm:$0xff]  ;;  %v1003_v1 = vcombine.low %v201_v49, %v205_v50  ;;  %v1058_v30 = vcombine.high %v252_v25, %v256_v26  ;;  %v235_v41 = vld [vmem:[%s1376_s11 + $0x150] sm:$0xff] }
  0x46   : > { %v197_v58 = vld [vmem:[%s1376_s11 + $0x20] sm:$0xff]  ;;  %v266_v0 = vld [vmem:[%s1376_s11 + $0x248] sm:$0x33]  ;;  %v998_v6 = vcombine.high %v194_v60, %v198_v61  ;;  %v997_v11 = vcombine.low %v194_v60, %v198_v61  ;;  %v239_v43 = vld [vmem:[%s1376_s11 + $0x170] sm:$0xff] }
  0x47   : > { %700 = vmatpush1.bf16.msra.mxu0 %v1027_v35  ;;  %741 = vmatpush1.bf16.msra.mxu1 %v1029_v37  ;;  %v265_v59 = vld [vmem:[%s1376_s11 + $0x240] sm:$0x33]  ;;  %v996_v3 = vcombine.high %v193_v57, %v197_v58  ;;  %v1070_v8 = vcombine.high %v266_v0, %v266_v0  ;;  %v995_v9 = vcombine.low %v193_v57, %v197_v58  ;;  %v258_v17 = vld [vmem:[%s1376_s11 + $0x208] sm:$0xff]  ;;  %v248_v35 = vld [vmem:[%s1376_s11 + $0x1b8] sm:$0xff] }
  0x48   : > { %701 = vmatprep.subr.bf16.mxu0 %v1020_v38  ;;  %742 = vmatprep.subr.bf16.mxu1 %v1022_v39  ;;  %v1068_v4 = vcombine.high %v265_v59, %v265_v59  ;;  %v269_v5 = vld [vmem:[%s1540_s2] sm:$0xff]  ;;  %v1067_v10 = vcombine.low %v265_v59, %v265_v59  ;;  %v1069_v13 = vcombine.low %v266_v0, %v266_v0  ;;  %v262_v18 = vld [vmem:[%s1376_s11 + $0x228] sm:$0xff]  ;;  %v236_v36 = vld [vmem:[%s1376_s11 + $0x158] sm:$0xff] }
  0x49   : > { %272 = vperm.xlu0 %1147, %v269_v5   ;;  %v679_v14 = vand.u32 %v1070_v8, %v1432_v7  ;;  %v257_v15 = vld [vmem:[%s1376_s11 + $0x200] sm:$0xff]  ;;  %v1062_v22 = vcombine.high %v258_v17, %v262_v18  ;;  %v1061_v28 = vcombine.low %v258_v17, %v262_v18  ;;  %v1055_v37 = vcombine.low %v251_v23, %v255_v24  ;;  %v240_v44 = vld [vmem:[%s1376_s11 + $0x178] sm:$0xff]  ;;  %v227_v49 = vld [vmem:[%s1376_s11 + $0x110] sm:$0xff] }
  0x4a   : > { %v673_v12 = vand.u32 %v1068_v4, %v1432_v7  ;;  %v261_v16 = vld [vmem:[%s1376_s11 + $0x220] sm:$0xff]  ;;  %v670_v19 = vand.u32 %v1067_v10, %v1432_v7  ;;  %v676_v20 = vand.u32 %v1069_v13, %v1432_v7  ;;  %v1057_v38 = vcombine.low %v252_v25, %v256_v26  ;;  %v231_v50 = vld [vmem:[%s1376_s11 + $0x130] sm:$0xff]  ;;  %v228_v51 = vld [vmem:[%s1376_s11 + $0x118] sm:$0xff] }
  0x4b   : > { %702 = vmatpush1.bf16.msra.mxu0 %v1019_v45  ;;  %743 = vmatpush1.bf16.msra.mxu1 %v1021_v46  ;;  %v1060_v21 = vcombine.high %v257_v15, %v261_v16  ;;  %v1059_v27 = vcombine.low %v257_v15, %v261_v16  ;;  %v1048_v39 = vcombine.high %v243_v31, %v247_v32  ;;  %v232_v52 = vld [vmem:[%s1376_s11 + $0x138] sm:$0xff]  ;;  %v219_v57 = vld [vmem:[%s1376_s11 + $0xd0] sm:$0xff] }
  0x4c   : > { %703 = vmatprep.subr.bf16.mxu0 %v1012_v47  ;;  %744 = vmatprep.subr.bf16.mxu1 %v1014_v48  ;;  %v1050_v40 = vcombine.high %v244_v34, %v248_v35  ;;  %v1047_v45 = vcombine.low %v243_v31, %v247_v32  ;;  %v1049_v46 = vcombine.low %v244_v34, %v248_v35  ;;  %v223_v58 = vld [vmem:[%s1376_s11 + $0xf0] sm:$0xff]  ;;  %v220_v59 = vld [vmem:[%s1376_s11 + $0xd8] sm:$0xff] }
  0x4d   : > { %v1040_v47 = vcombine.high %v235_v41, %v239_v43  ;;  %v1042_v48 = vcombine.high %v236_v36, %v240_v44  ;;  %v224_v60 = vld [vmem:[%s1376_s11 + $0xf8] sm:$0xff]  ;;  %v1031_v61 = vcombine.low %v227_v49, %v231_v50  ;;  %v1024_v62 = vcombine.high %v219_v57, %v223_v58  ;;  %v211_v0 = vld [vmem:[%s1376_s11 + $0x90] sm:$0xff] }
  0x4e   : > { %v1026_v63 = vcombine.high %v220_v59, %v224_v60  ;;  %v1023_v4 = vcombine.low %v219_v57, %v223_v58  ;;  %v1025_v5 = vcombine.low %v220_v59, %v224_v60  ;;  %v207_v10 = vld [vmem:[%s1376_s11 + $0x70] sm:$0xff] }
  0x4f   : > { %704 = vmatpush1.bf16.msra.mxu0 %v1011_v53  ;;  %745 = vmatpush1.bf16.msra.mxu1 %v1013_v54  ;;  %v1039_v53 = vcombine.low %v235_v41, %v239_v43  ;;  %v1041_v54 = vcombine.low %v236_v36, %v240_v44  ;;  %v195_v17 = vld [vmem:[%s1376_s11 + $0x10] sm:$0xff] }
  0x50   : > { %705 = vmatprep.subr.bf16.mxu0 %v1004_v55  ;;  %746 = vmatprep.subr.bf16.mxu1 %v1006_v56  ;;  %v1032_v55 = vcombine.high %v227_v49, %v231_v50  ;;  %v1034_v56 = vcombine.high %v228_v51, %v232_v52  ;;  %v199_v18 = vld [vmem:[%s1376_s11 + $0x30] sm:$0xff] }
  0x51   : > { %v1000_v25 = vcombine.high %v195_v17, %v199_v18 }
  0x53   : > { %706 = vmatpush1.bf16.msra.mxu0 %v1003_v1  ;;  %747 = vmatpush1.bf16.msra.mxu1 %v1005_v2  ;;  %v215_v1 = vld [vmem:[%s1376_s11 + $0xb0] sm:$0xff]  ;;  %v212_v2 = vld [vmem:[%s1376_s11 + $0x98] sm:$0xff] }
  0x54   : > { %707 = vmatprep.subr.bf16.mxu0 %v996_v3  ;;  %748 = vmatprep.subr.bf16.mxu1 %v998_v6  ;;  %v216_v3 = vld [vmem:[%s1376_s11 + $0xb8] sm:$0xff]  ;;  %v1016_v6 = vcombine.high %v211_v0, %v215_v1  ;;  %v1015_v13 = vcombine.low %v211_v0, %v215_v1 }
  0x55   : > { %v1018_v8 = vcombine.high %v212_v2, %v216_v3 }
  0x57   : > { %708 = vmatpush1.bf16.msra.mxu0 %v995_v9  ;;  %749 = vmatpush1.bf16.msra.mxu1 %v997_v11  ;;  %v203_v9 = vld [vmem:[%s1376_s11 + $0x50] sm:$0xff]  ;;  %v204_v11 = vld [vmem:[%s1376_s11 + $0x58] sm:$0xff] }
  0x58   : > { %721 = vmatprep.subr.bf16.mxu0 %v673_v12  ;;  %762 = vmatprep.subr.bf16.mxu1 %v679_v14  ;;  %v208_v12 = vld [vmem:[%s1376_s11 + $0x78] sm:$0xff]  ;;  %v1017_v14 = vcombine.low %v212_v2, %v216_v3  ;;  %v1008_v15 = vcombine.high %v203_v9, %v207_v10  ;;  %v1007_v23 = vcombine.low %v203_v9, %v207_v10 }
  0x59   : > { %v1010_v16 = vcombine.high %v204_v11, %v208_v12  ;;  %v1009_v24 = vcombine.low %v204_v11, %v208_v12 }
  0x5b   : > { %722 = vmatpush2.bf16.msra.mxu0 %v670_v19  ;;  %763 = vmatpush2.bf16.msra.mxu1 %v676_v20  ;;  %v267_v19 = vld [vmem:[%s1376_s11 + $0x250] sm:$0x33]  ;;  %v196_v20 = vld [vmem:[%s1376_s11 + $0x18] sm:$0xff] }
  0x5c   : > { %723 = vmatprep.subr.bf16.mxu0 %v1060_v21  ;;  %764 = vmatprep.subr.bf16.mxu1 %v1062_v22  ;;  %v200_v21 = vld [vmem:[%s1376_s11 + $0x38] sm:$0xff]  ;;  %v1072_v26 = vcombine.high %v267_v19, %v267_v19 }
  0x5d   : > { %v268_v22 = vld [vmem:[%s1376_s11 + $0x258] sm:$0x33]  ;;  %v1001_v31 = vcombine.low %v196_v20, %v200_v21 }
  0x5e   : > { %v685_v32 = vand.u32 %v1072_v26, %v1432_v7  ;;  %v1073_v34 = vcombine.low %v268_v22, %v268_v22 }
  0x5f   : > { %724 = vmatpush2.bf16.msra.mxu0 %v1059_v27  ;;  %765 = vmatpush2.bf16.msra.mxu1 %v1061_v28  ;;  %v1002_v27 = vcombine.high %v196_v20, %v200_v21  ;;  %v1074_v28 = vcombine.high %v268_v22, %v268_v22 }
  0x60   : > { %775 = vmatprep.subr.bf16.mxu0 %v1056_v29  ;;  %816 = vmatprep.subr.bf16.mxu1 %v1058_v30  ;;  %v999_v29 = vcombine.low %v195_v17, %v199_v18  ;;  %v1071_v30 = vcombine.low %v267_v19, %v267_v19  ;;  %v688_v43 = vand.u32 %v1073_v34, %v1432_v7 }
  0x61   : > { %v691_v35 = vand.u32 %v1074_v28, %v1432_v7 }
  0x62   : > { %726 = vmatmul.mubr.bf16.vlgmr.msra.gmra.mxu0 %v1450_v33  ;;  %767 = vmatmul.mubr.bf16.vlgmr.msra.gmra.mxu1 %v1450_v33  ;;  %v682_v41 = vand.u32 %v1071_v30, %v1432_v7 }
  0x63   : > { %776 = vmatpush1.bf16.msra.mxu0 %v1055_v37  ;;  %817 = vmatpush1.bf16.msra.mxu1 %v1057_v38  ;;  %v259_v37 = vld [vmem:[%s1376_s11 + $0x210] sm:$0xff] }
  0x64   : > { %777 = vmatprep.subr.bf16.mxu0 %v1048_v39  ;;  %818 = vmatprep.subr.bf16.mxu1 %v1050_v40  ;;  %v263_v38 = vld [vmem:[%s1376_s11 + $0x230] sm:$0xff]  ;;  %v260_v39 = vld [vmem:[%s1376_s11 + $0x218] sm:$0xff] }
  0x65   : > { %1077 = vmatprep.mubr.msk.bf16.mxu0 %vm661_vm0, %v1411_v42  ;;  %1078 = vmatprep.mubr.msk.bf16.mxu1 %vm661_vm0, %v1411_v42  ;;  %v1033_v42 = vcombine.low %v228_v51, %v232_v52  ;;  %v264_v40 = vld [vmem:[%s1376_s11 + $0x238] sm:$0xff]  ;;  %v1064_v36 = vcombine.high %v259_v37, %v263_v38 }
  0x66   : > { %v1066_v44 = vcombine.high %v260_v39, %v264_v40 }
  0x67   : > { %778 = vmatpush1.bf16.msra.mxu0 %v1047_v45  ;;  %819 = vmatpush1.bf16.msra.mxu1 %v1049_v46  ;;  %v1063_v45 = vcombine.low %v259_v37, %v263_v38  ;;  %v1065_v46 = vcombine.low %v260_v39, %v264_v40 }
  0x68   : > { %779 = vmatprep.subr.bf16.mxu0 %v1040_v47  ;;  %820 = vmatprep.subr.bf16.mxu1 %v1042_v48 }
  0x6b   : > { %780 = vmatpush1.bf16.msra.mxu0 %v1039_v53  ;;  %821 = vmatpush1.bf16.msra.mxu1 %v1041_v54 }
  0x6c   : > { %781 = vmatprep.subr.bf16.mxu0 %v1032_v55  ;;  %822 = vmatprep.subr.bf16.mxu1 %v1034_v56 }
  0x6f   : > { %782 = vmatpush1.bf16.msra.mxu0 %v1031_v61  ;;  %823 = vmatpush1.bf16.msra.mxu1 %v1033_v42 }
  0x70   : > { %783 = vmatprep.subr.bf16.mxu0 %v1024_v62  ;;  %824 = vmatprep.subr.bf16.mxu1 %v1026_v63 }
  0x73   : > { %784 = vmatpush1.bf16.msra.mxu0 %v1023_v4  ;;  %825 = vmatpush1.bf16.msra.mxu1 %v1025_v5 }
  0x74   : > { %785 = vmatprep.subr.bf16.mxu0 %v1016_v6  ;;  %826 = vmatprep.subr.bf16.mxu1 %v1018_v8 }
  0x77   : > { %786 = vmatpush1.bf16.msra.mxu0 %v1015_v13  ;;  %827 = vmatpush1.bf16.msra.mxu1 %v1017_v14 }
  0x78   : > { %787 = vmatprep.subr.bf16.mxu0 %v1008_v15  ;;  %828 = vmatprep.subr.bf16.mxu1 %v1010_v16 }
  0x7b   : > { %788 = vmatpush1.bf16.msra.mxu0 %v1007_v23  ;;  %829 = vmatpush1.bf16.msra.mxu1 %v1009_v24 }
  0x7c   : > { %789 = vmatprep.subr.bf16.mxu0 %v1000_v25  ;;  %830 = vmatprep.subr.bf16.mxu1 %v1002_v27 }
  0x7f   : > { %790 = vmatpush1.bf16.msra.mxu0 %v999_v29  ;;  %831 = vmatpush1.bf16.msra.mxu1 %v1001_v31 }
  0x80   : > { %803 = vmatprep.subr.bf16.mxu0 %v685_v32  ;;  %844 = vmatprep.subr.bf16.mxu1 %v691_v35 }
  0x83   : > { %804 = vmatpush2.bf16.msra.mxu0 %v682_v41  ;;  %845 = vmatpush2.bf16.msra.mxu1 %v688_v43 }
  0x84   : > { %805 = vmatprep.subr.bf16.mxu0 %v1064_v36  ;;  %846 = vmatprep.subr.bf16.mxu1 %v1066_v44 }
  0x87   : > { %806 = vmatpush2.bf16.msra.mxu0 %v1063_v45  ;;  %847 = vmatpush2.bf16.msra.mxu1 %v1065_v46 }
  0x8a   : > { %808 = vmatmul.mubr.bf16.vlgmr.msra.gmra.mxu0 %v1450_v33  ;;  %849 = vmatmul.mubr.bf16.vlgmr.msra.gmra.mxu1 %v1450_v33 }
  0xc4   : > { %v273_v47 = vpop.permute.xlu0 %272 }
 0x122   : > { %v727_v48 = vpop.f32.mrf.mxu0  ;;  %v768_v49 = vpop.f32.mrf.mxu1 }
 0x123   : > { %v728_v7 = vadd.f32 %v727_v48, %v273_v47  ;;  %v769_v51 = vadd.f32 %v768_v49, %v273_v47 }
 0x124   : > { %v729_v50 = vpop.f32.mrf.mxu0  ;;  %v770_v54 = vpop.f32.mrf.mxu1 }
 0x125   : > { %v730_v52 = vadd.f32 %v729_v50, %v273_v47  ;;  %v857_v53 = vmax.f32 %v728_v7, 0.0  ;;  %v771_v55 = vadd.f32 %v770_v54, %v273_v47  ;;  %v859_v56 = vmax.f32 %v769_v51, 0.0 }
 0x126   : > { %v731_v57 = vpop.f32.mrf.mxu0  ;;  %v772_v59 = vpop.f32.mrf.mxu1 }
 0x127   : > { %v858_v58 = vmax.f32 %v730_v52, 0.0  ;;  %v860_v60 = vmax.f32 %v771_v55, 0.0 }
 0x128   : > { %v732_v61 = vpop.f32.mrf.mxu0  ;;  %v773_v62 = vpop.f32.mrf.mxu1 }
 0x129   : > { %v1089_v42 = vpack.c.bf16 %v858_v58, %v857_v53  ;;  %v1090_v33 = vpack.c.bf16 %v860_v60, %v859_v56 }
 0x12b   : > { %897 = vst [vmem:[%s188_s17] sm:$0xff] %v1089_v42  ;;  %898 = vst [vmem:[%s188_s17 + $0x8] sm:$0xff] %v1090_v33 }
 0x14a   : > { %v809_v63 = vpop.f32.mrf.mxu0  ;;  %v850_v1 = vpop.f32.mrf.mxu1 }
 0x14b   : > { %v810_v0 = vadd.f32 %v809_v63, %v273_v47  ;;  %v851_v2 = vadd.f32 %v850_v1, %v273_v47 }
 0x14c   : > { %v811_v3 = vpop.f32.mrf.mxu0  ;;  %v852_v5 = vpop.f32.mrf.mxu1 }
 0x14d   : > { %v812_v4 = vadd.f32 %v811_v3, %v273_v47  ;;  %v853_v6 = vadd.f32 %v852_v5, %v273_v47  ;;  %v861_v9 = vmax.f32 %v810_v0, 0.0  ;;  %v863_v12 = vmax.f32 %v851_v2, 0.0 }
 0x14e   : > { %v813_v8 = vpop.f32.mrf.mxu0  ;;  %v854_v11 = vpop.f32.mrf.mxu1 }
 0x14f   : > { %v862_v10 = vmax.f32 %v812_v4, 0.0  ;;  %v864_v13 = vmax.f32 %v853_v6, 0.0 }
 0x150   : > { %v814_v14 = vpop.f32.mrf.mxu0  ;;  %v855_v16 = vpop.f32.mrf.mxu1 }
 0x151   : > { %v1091_v15 = vpack.c.bf16 %v862_v10, %v861_v9  ;;  %v1092_v17 = vpack.c.bf16 %v864_v13, %v863_v12 }
 0x153   : > { %899 = vst [vmem:[%s188_s17 + $0x10] sm:$0xff] %v1091_v15  ;;  %900 = vst [vmem:[%s188_s17 + $0x18] sm:$0xff] %v1092_v17 }
 0x154   : > { %1199 = shalt.err (!%p1196_p10)
}
 0x155   : > { %s1200_s10 = scalar_lea.hbm %s1501_s27, 512  ;;  %s1204_s22 = scalar_lea.hbm %s1541_s3, 1024 }
 0x156   : > { %p1201_p1 = scmp.ne.s32.totalorder %s1501_s27, %s1200_s10  ;;  %p1205_p0 = scmp.lt.s32.totalorder %s1501_s27, %s1541_s3 }
 0x157   : > { %p1206_p2 = scmp.lt.s32.totalorder %s1204_s22, %s1200_s10 }
 0x158   : > { %p1202_p3 = pnand %p1201_p1, %p1550_p12 }
 0x159   : > { %p1207_p6 = por %p1206_p2, %p1205_p0 }
 0x15a   : > { %p1203_p9 = pneg %p1202_p3 }
 0x15c   : > { %p1208_p11 = pnand %p1207_p6, %p1203_p9 }
 0x15e   : > { %1211 = shalt.err (!%p1208_p11)
}
 0x15f   : > { %1098 = dma.vmem_to_hbm [thread:$0]  (%p1550_p12), %s917_s20, 512, %s1501_s27, %s902_s28  }
 0x160 PF: > { %s928_s6 = sand.u32 1, %s1238_s12   ;;  %p1551_p13 = scmp.ne.s32.totalorder %s1546_s24, 0 }
 0x161   : > { %p1552_p4 = scmp.ge.s32.totalorder %s1250_s15, 2  ;;  %s929_s7 = scalar_lea.sflag [#allocation4], %s928_s6 }
 0x163   : > { %p1105_p5 = pnand %p1552_p4, %p1551_p13 }
 0x165   : > { %p1106_p7 = pneg %p1105_p5 }
 0x167   : > { %1233 = dma.done.wait (%p1106_p7), %s929_s7, 512  }
 0x168   : > { %1235 = vsyncadd (%p1106_p7), %s929_s7, 4294966784  ;;  %p16_p8 = scmp.ge.s32.totalorder %s1304_s18, 4   ;;  %s1553_s12 = smov %s1242_s13 }
 0x169   : > { %s1554_s13 = smov %s1246_s14  ;;  %s1555_s14 = smov %s1316_s21 }
 0x16a   : > { %s1556_s15 = smov %s1304_s18  ;;  %18 = sbr.rel (!%p16_p8) target bundleno = 5 (0x5), region = 77 }
 0x16f   :  { %934 = vsyncpa [#allocation3], 1 }
 0x170   :  { %936 = vsyncpa [#allocation3 + $0x1], 1 }
 0x171   :  { %937 = vsyncpa [#allocation4], 1 }
 0x172   :  { %939 = vsyncpa [#allocation4 + $0x1], 1 }

</bundles_post_ra>
